<compile_context>
chip_gen: v6e
topology: v6e:2x2x1
jax: 0.10.0
libtpu: 0.0.40
codegen_flags: <defaults>
</compile_context>

<pallas_src>
import functools

import jax
import jax.numpy as jnp
from jax import lax
from jax.experimental import pallas as pl
from jax.experimental.pallas import tpu as pltpu


def _resblock_kernel(x_ref, w1_ref, b1_ref, w2_ref, b2_ref, out_ref,
                     *, N, C, H, W, K, atrous, slope):
    # x_ref  : (N*C, H*W)          input, image-major rows, flat spatial on lanes
    # w*_ref : (N*C, K*K*N*C)      block-diagonal im2col weight matrices
    # b*_ref : (N*C, 1)            biases (tiled per image)
    # out_ref: (N*C, H*W)
    HW = H * W
    R = N * C
    half = K // 2

    x = x_ref[...]                                     # single DMA of x, reused for residual

    # ---- lane-index decomposition (built once, shared by all masks) ----
    flat = lax.broadcasted_iota(jnp.int32, (R, HW), 1)
    if W & (W - 1) == 0:
        xx = flat & (W - 1)
        yy = flat >> (W.bit_length() - 1)
    else:
        xx = flat % W
        yy = flat // W

    # Tap order (dy outer, dx inner) must match the host-side weight construction.
    taps = [(dy - half, dx - half) for dy in range(K) for dx in range(K)]

    # ---- tap masks, built once per dilation actually used ----
    def build_masks(dil):
        masks = {}
        for ty, tx in taps:
            ddy, ddx = ty * dil, tx * dil
            conds = []
            if ddy < 0:
                conds.append(yy >= -ddy)
            if ddy > 0:
                conds.append(yy < H - ddy)
            if ddx < 0:
                conds.append(xx >= -ddx)
            if ddx > 0:
                conds.append(xx < W - ddx)
            m = None
            for c in conds:
                m = c if m is None else (m & c)
            masks[(ddy, ddx)] = m          # None for the center tap
        return masks

    mask_sets = {d: build_masks(d) for d in sorted({1, atrous})}

    def conv(v, wbd, bias, dil):
        """Zero-padded KxK conv (dilation `dil`) of the whole batch in one matmul."""
        masks = mask_sets[dil]
        parts = []
        for ty, tx in taps:
            ddy, ddx = ty * dil, tx * dil
            s = ddy * W + ddx
            t = v if s == 0 else pltpu.roll(v, shift=(-s) % HW, axis=1)
            m = masks[(ddy, ddx)]
            parts.append(t if m is None else jnp.where(m, t, 0.0))
        # Each part is a full (R, HW) tile -> sublane-aligned stack, no relayout.
        slab = jnp.concatenate(parts, axis=0)          # (K*K*R, HW); K*K*R % 8 == 0
        return jnp.dot(wbd, slab, preferred_element_type=jnp.float32) + bias

    # ---- conv1 (dilation 1) + bias + LeakyReLU ----
    h = conv(x, w1_ref[...], b1_ref[...], 1)
    h = jnp.maximum(h, slope * h)                      # LeakyReLU, 0 < slope < 1

    # ---- conv2 (dilation = atrous) + bias + residual add ----
    y = conv(h, w2_ref[...], b2_ref[...], atrous)
    out_ref[...] = (y + x).astype(out_ref.dtype)


def _block_diag_weight(w, N):
    """(K,K,Cin,Cout) HWIO -> block-diagonal (N*Cout, K*K*N*Cin) im2col matrix.

    Row   r = n*C + c_out.
    Col   q = tap*(N*C) + m*C + c_in, nonzero only for m == n.
    Matches the kernel's slab row order (tap, image, c_in).
    """
    K, _, C, Co = w.shape
    wt = w.reshape(K * K, C, Co)                       # (tap, ci, co)
    eye = jnp.eye(N, dtype=w.dtype)
    wbd = jnp.einsum('tio,nm->notmi', wt, eye)         # (n, co, tap, m, ci)
    return wbd.reshape(N * Co, K * K * N * C)


def resblock_pallas(x_nchw, w1, b1, w2, b2, *, atrous=1, slope=0.01):
    """x_nchw: (N, C, H, W) f32.  w*: (K, K, Cin, Cout) HWIO.  b*: (C,)."""
    N, C, H, W = x_nchw.shape
    K = w1.shape[0]
    HW = H * W
    R = N * C
    KKR = K * K * R

    # Pure reshape (no copy / transpose / pad): image-major rows, flat spatial on lanes.
    x2d = x_nchw.reshape(R, HW).astype(jnp.float32)
    w1m = _block_diag_weight(w1.astype(jnp.float32), N)        # (R, K*K*R)
    w2m = _block_diag_weight(w2.astype(jnp.float32), N)
    b1c = jnp.tile(b1.astype(jnp.float32), N).reshape(R, 1)    # (R, 1)
    b2c = jnp.tile(b2.astype(jnp.float32), N).reshape(R, 1)

    kernel = functools.partial(_resblock_kernel, N=N, C=C, H=H, W=W, K=K,
                               atrous=atrous, slope=slope)

    out2d = pl.pallas_call(
        kernel,
        out_shape=jax.ShapeDtypeStruct((R, HW), jnp.float32),
        grid=(1,),   # whole batch in one step (~16 KB traffic, fixed-overhead regime)
        in_specs=[
            pl.BlockSpec((R, HW), lambda i: (0, 0)),
            pl.BlockSpec((R, KKR), lambda i: (0, 0)),
            pl.BlockSpec((R, 1), lambda i: (0, 0)),
            pl.BlockSpec((R, KKR), lambda i: (0, 0)),
            pl.BlockSpec((R, 1), lambda i: (0, 0)),
        ],
        out_specs=pl.BlockSpec((R, HW), lambda i: (0, 0)),
        compiler_params=pltpu.CompilerParams(
            dimension_semantics=("arbitrary",)),
    )(x2d, w1m, b1c, w2m, b2c)

    return out2d.reshape(N, C, H, W)


def resblock_reference(x_nchw, w1, b1, w2, b2, *, atrous=1, slope=0.01):
    """Pure-JAX reference (lax.conv_general_dilated), NHWC internally."""
    K = w1.shape[0]
    p1 = K // 2
    p2 = (K // 2) * atrous
    x = jnp.transpose(x_nchw, (0, 2, 3, 1))
    dn = ('NHWC', 'HWIO', 'NHWC')
    h = lax.conv_general_dilated(x, w1, window_strides=(1, 1),
                                 padding=[(p1, p1), (p1, p1)],
                                 dimension_numbers=dn) + b1
    h = jnp.where(h > 0, h, slope * h)
    y = lax.conv_general_dilated(h, w2, window_strides=(1, 1),
                                 padding=[(p2, p2), (p2, p2)],
                                 rhs_dilation=(atrous, atrous),
                                 dimension_numbers=dn) + b2
    y = y + x
    return jnp.transpose(y, (0, 3, 1, 2))


if __name__ == "__main__":
    # ResBlock(n_feats=4, kernel_size=3, act='leaky_relu', atrous=1, bn=False)
    N, C, H, W, K = 2, 4, 16, 16, 3
    ATROUS = 1

    key = jax.random.PRNGKey(0)
    kx, k1, k2, kb1, kb2 = jax.random.split(key, 5)

    x = jax.random.normal(kx, (N, C, H, W), dtype=jnp.float32)

    # deterministic synthetic conv params (HWIO), scaled ~ 1/sqrt(fan_in)
    fan_in = C * K * K
    bound = 1.0 / (fan_in ** 0.5)
    w1 = jax.random.uniform(k1, (K, K, C, C), jnp.float32, -bound, bound)
    w2 = jax.random.uniform(k2, (K, K, C, C), jnp.float32, -bound, bound)
    b1 = jax.random.uniform(kb1, (C,), jnp.float32, -bound, bound)
    b2 = jax.random.uniform(kb2, (C,), jnp.float32, -bound, bound)

    y = jax.block_until_ready(resblock_pallas(x, w1, b1, w2, b2, atrous=ATROUS))
    y_ref = jax.block_until_ready(
        resblock_reference(x, w1, b1, w2, b2, atrous=ATROUS))

    assert y.shape == (N, C, H, W)
    assert jnp.allclose(y, y_ref, atol=1e-4, rtol=1e-4), "mismatch vs JAX reference"

    print("KERNEL_OK")
</pallas_src>

<mosaic_0001>
module attributes {stable_mosaic.version = 11 : i64} {
  func.func @_resblock_kernel(%arg0: i32, %arg1: memref<8x256xf32, #tpu.memory_space<vmem>>, %arg2: memref<8x72xf32, #tpu.memory_space<vmem>>, %arg3: memref<8x1xf32, #tpu.memory_space<vmem>>, %arg4: memref<8x72xf32, #tpu.memory_space<vmem>>, %arg5: memref<8x1xf32, #tpu.memory_space<vmem>>, %arg6: memref<8x256xf32, #tpu.memory_space<vmem>>) attributes {dimension_semantics = [#tpu.dimension_semantics<arbitrary>], iteration_bounds = array<i64: 1>, scalar_prefetch = 0 : i64, scratch_operands = 0 : i64, tpu.core_type = #tpu.core_type<tc>, window_params = [{pipeline_mode = #tpu.pipeline_mode<synchronous>, transform_indices = @transform_0, window_bounds = array<i64: 8, 256>}, {pipeline_mode = #tpu.pipeline_mode<synchronous>, transform_indices = @transform_1, window_bounds = array<i64: 8, 72>}, {pipeline_mode = #tpu.pipeline_mode<synchronous>, transform_indices = @transform_2, window_bounds = array<i64: 8, 1>}, {pipeline_mode = #tpu.pipeline_mode<synchronous>, transform_indices = @transform_3, window_bounds = array<i64: 8, 72>}, {pipeline_mode = #tpu.pipeline_mode<synchronous>, transform_indices = @transform_4, window_bounds = array<i64: 8, 1>}, {pipeline_mode = #tpu.pipeline_mode<synchronous>, transform_indices = @transform_5, window_bounds = array<i64: 8, 256>}]} {
    %c0 = arith.constant 0 : index
    %c0_0 = arith.constant 0 : index
    %0 = vector.load %arg1[%c0, %c0_0] : memref<8x256xf32, #tpu.memory_space<vmem>>, vector<8x256xf32>
    %1 = tpu.iota {dimensions = array<i32: 1>} : vector<8x256xi32>
    %c15_i32 = arith.constant 15 : i32
    %2 = vector.broadcast %c15_i32 : i32 to vector<8x256xi32>
    %3 = arith.andi %1, %2 : vector<8x256xi32>
    %c4_i32 = arith.constant 4 : i32
    %4 = vector.broadcast %c4_i32 : i32 to vector<8x256xi32>
    %5 = arith.shrsi %1, %4 : vector<8x256xi32>
    %c1_i32 = arith.constant 1 : i32
    %6 = vector.broadcast %c1_i32 : i32 to vector<8x256xi32>
    %7 = arith.cmpi sge, %5, %6 : vector<8x256xi32>
    %c1_i32_1 = arith.constant 1 : i32
    %8 = vector.broadcast %c1_i32_1 : i32 to vector<8x256xi32>
    %9 = arith.cmpi sge, %3, %8 : vector<8x256xi32>
    %10 = arith.andi %7, %9 : vector<8x256xi1>
    %c1_i32_2 = arith.constant 1 : i32
    %11 = vector.broadcast %c1_i32_2 : i32 to vector<8x256xi32>
    %12 = arith.cmpi sge, %5, %11 : vector<8x256xi32>
    %c1_i32_3 = arith.constant 1 : i32
    %13 = vector.broadcast %c1_i32_3 : i32 to vector<8x256xi32>
    %14 = arith.cmpi sge, %5, %13 : vector<8x256xi32>
    %c15_i32_4 = arith.constant 15 : i32
    %15 = vector.broadcast %c15_i32_4 : i32 to vector<8x256xi32>
    %16 = arith.cmpi slt, %3, %15 : vector<8x256xi32>
    %17 = arith.andi %14, %16 : vector<8x256xi1>
    %c1_i32_5 = arith.constant 1 : i32
    %18 = vector.broadcast %c1_i32_5 : i32 to vector<8x256xi32>
    %19 = arith.cmpi sge, %3, %18 : vector<8x256xi32>
    %c15_i32_6 = arith.constant 15 : i32
    %20 = vector.broadcast %c15_i32_6 : i32 to vector<8x256xi32>
    %21 = arith.cmpi slt, %3, %20 : vector<8x256xi32>
    %c15_i32_7 = arith.constant 15 : i32
    %22 = vector.broadcast %c15_i32_7 : i32 to vector<8x256xi32>
    %23 = arith.cmpi slt, %5, %22 : vector<8x256xi32>
    %c1_i32_8 = arith.constant 1 : i32
    %24 = vector.broadcast %c1_i32_8 : i32 to vector<8x256xi32>
    %25 = arith.cmpi sge, %3, %24 : vector<8x256xi32>
    %26 = arith.andi %23, %25 : vector<8x256xi1>
    %c15_i32_9 = arith.constant 15 : i32
    %27 = vector.broadcast %c15_i32_9 : i32 to vector<8x256xi32>
    %28 = arith.cmpi slt, %5, %27 : vector<8x256xi32>
    %c15_i32_10 = arith.constant 15 : i32
    %29 = vector.broadcast %c15_i32_10 : i32 to vector<8x256xi32>
    %30 = arith.cmpi slt, %5, %29 : vector<8x256xi32>
    %c15_i32_11 = arith.constant 15 : i32
    %31 = vector.broadcast %c15_i32_11 : i32 to vector<8x256xi32>
    %32 = arith.cmpi slt, %3, %31 : vector<8x256xi32>
    %33 = arith.andi %30, %32 : vector<8x256xi1>
    %c0_12 = arith.constant 0 : index
    %c0_13 = arith.constant 0 : index
    %34 = vector.load %arg2[%c0_12, %c0_13] : memref<8x72xf32, #tpu.memory_space<vmem>>, vector<8x72xf32>
    %c0_14 = arith.constant 0 : index
    %c0_15 = arith.constant 0 : index
    %35 = vector.load %arg3[%c0_14, %c0_15] : memref<8x1xf32, #tpu.memory_space<vmem>>, vector<8x1xf32>
    %c17_i32 = arith.constant 17 : i32
    %36 = tpu.dynamic_rotate %0 by %c17_i32 dim 1 : vector<8x256xf32>, i32 -> vector<8x256xf32>
    %cst = arith.constant 0.000000e+00 : f32
    %37 = vector.broadcast %cst : f32 to vector<8x256xf32>
    %38 = arith.select %10, %36, %37 : vector<8x256xi1>, vector<8x256xf32>
    %c16_i32 = arith.constant 16 : i32
    %39 = tpu.dynamic_rotate %0 by %c16_i32 dim 1 : vector<8x256xf32>, i32 -> vector<8x256xf32>
    %cst_16 = arith.constant 0.000000e+00 : f32
    %40 = vector.broadcast %cst_16 : f32 to vector<8x256xf32>
    %41 = arith.select %12, %39, %40 : vector<8x256xi1>, vector<8x256xf32>
    %c15_i32_17 = arith.constant 15 : i32
    %42 = tpu.dynamic_rotate %0 by %c15_i32_17 dim 1 : vector<8x256xf32>, i32 -> vector<8x256xf32>
    %cst_18 = arith.constant 0.000000e+00 : f32
    %43 = vector.broadcast %cst_18 : f32 to vector<8x256xf32>
    %44 = arith.select %17, %42, %43 : vector<8x256xi1>, vector<8x256xf32>
    %c1_i32_19 = arith.constant 1 : i32
    %45 = tpu.dynamic_rotate %0 by %c1_i32_19 dim 1 : vector<8x256xf32>, i32 -> vector<8x256xf32>
    %cst_20 = arith.constant 0.000000e+00 : f32
    %46 = vector.broadcast %cst_20 : f32 to vector<8x256xf32>
    %47 = arith.select %19, %45, %46 : vector<8x256xi1>, vector<8x256xf32>
    %c255_i32 = arith.constant 255 : i32
    %48 = tpu.dynamic_rotate %0 by %c255_i32 dim 1 : vector<8x256xf32>, i32 -> vector<8x256xf32>
    %cst_21 = arith.constant 0.000000e+00 : f32
    %49 = vector.broadcast %cst_21 : f32 to vector<8x256xf32>
    %50 = arith.select %21, %48, %49 : vector<8x256xi1>, vector<8x256xf32>
    %c241_i32 = arith.constant 241 : i32
    %51 = tpu.dynamic_rotate %0 by %c241_i32 dim 1 : vector<8x256xf32>, i32 -> vector<8x256xf32>
    %cst_22 = arith.constant 0.000000e+00 : f32
    %52 = vector.broadcast %cst_22 : f32 to vector<8x256xf32>
    %53 = arith.select %26, %51, %52 : vector<8x256xi1>, vector<8x256xf32>
    %c240_i32 = arith.constant 240 : i32
    %54 = tpu.dynamic_rotate %0 by %c240_i32 dim 1 : vector<8x256xf32>, i32 -> vector<8x256xf32>
    %cst_23 = arith.constant 0.000000e+00 : f32
    %55 = vector.broadcast %cst_23 : f32 to vector<8x256xf32>
    %56 = arith.select %28, %54, %55 : vector<8x256xi1>, vector<8x256xf32>
    %c239_i32 = arith.constant 239 : i32
    %57 = tpu.dynamic_rotate %0 by %c239_i32 dim 1 : vector<8x256xf32>, i32 -> vector<8x256xf32>
    %cst_24 = arith.constant 0.000000e+00 : f32
    %58 = vector.broadcast %cst_24 : f32 to vector<8x256xf32>
    %59 = arith.select %33, %57, %58 : vector<8x256xi1>, vector<8x256xf32>
    %60 = tpu.concatenate %38, %41, %44, %47, %0, %50, %53, %56, %59 in 0 : vector<8x256xf32>, vector<8x256xf32>, vector<8x256xf32>, vector<8x256xf32>, vector<8x256xf32>, vector<8x256xf32>, vector<8x256xf32>, vector<8x256xf32>, vector<8x256xf32> -> vector<72x256xf32>
    %cst_25 = arith.constant dense<0.000000e+00> : vector<8x256xf32>
    %61 = tpu.matmul %34, %60, %cst_25 {dimension_numbers = #tpu.dot_dimension_numbers<[1], [0], [0], [1], [0, 0, 1, 1], [], []>} : vector<8x72xf32>, vector<72x256xf32>, vector<8x256xf32> -> vector<8x256xf32>
    %62 = vector.broadcast %35 : vector<8x1xf32> to vector<8x256xf32>
    %63 = arith.addf %61, %62 : vector<8x256xf32>
    %cst_26 = arith.constant 0.00999999977 : f32
    %64 = vector.broadcast %cst_26 : f32 to vector<8x256xf32>
    %65 = arith.mulf %64, %63 : vector<8x256xf32>
    %66 = arith.maximumf %63, %65 : vector<8x256xf32>
    %c0_27 = arith.constant 0 : index
    %c0_28 = arith.constant 0 : index
    %67 = vector.load %arg4[%c0_27, %c0_28] : memref<8x72xf32, #tpu.memory_space<vmem>>, vector<8x72xf32>
    %c0_29 = arith.constant 0 : index
    %c0_30 = arith.constant 0 : index
    %68 = vector.load %arg5[%c0_29, %c0_30] : memref<8x1xf32, #tpu.memory_space<vmem>>, vector<8x1xf32>
    %c17_i32_31 = arith.constant 17 : i32
    %69 = tpu.dynamic_rotate %66 by %c17_i32_31 dim 1 : vector<8x256xf32>, i32 -> vector<8x256xf32>
    %cst_32 = arith.constant 0.000000e+00 : f32
    %70 = vector.broadcast %cst_32 : f32 to vector<8x256xf32>
    %71 = arith.select %10, %69, %70 : vector<8x256xi1>, vector<8x256xf32>
    %c16_i32_33 = arith.constant 16 : i32
    %72 = tpu.dynamic_rotate %66 by %c16_i32_33 dim 1 : vector<8x256xf32>, i32 -> vector<8x256xf32>
    %cst_34 = arith.constant 0.000000e+00 : f32
    %73 = vector.broadcast %cst_34 : f32 to vector<8x256xf32>
    %74 = arith.select %12, %72, %73 : vector<8x256xi1>, vector<8x256xf32>
    %c15_i32_35 = arith.constant 15 : i32
    %75 = tpu.dynamic_rotate %66 by %c15_i32_35 dim 1 : vector<8x256xf32>, i32 -> vector<8x256xf32>
    %cst_36 = arith.constant 0.000000e+00 : f32
    %76 = vector.broadcast %cst_36 : f32 to vector<8x256xf32>
    %77 = arith.select %17, %75, %76 : vector<8x256xi1>, vector<8x256xf32>
    %c1_i32_37 = arith.constant 1 : i32
    %78 = tpu.dynamic_rotate %66 by %c1_i32_37 dim 1 : vector<8x256xf32>, i32 -> vector<8x256xf32>
    %cst_38 = arith.constant 0.000000e+00 : f32
    %79 = vector.broadcast %cst_38 : f32 to vector<8x256xf32>
    %80 = arith.select %19, %78, %79 : vector<8x256xi1>, vector<8x256xf32>
    %c255_i32_39 = arith.constant 255 : i32
    %81 = tpu.dynamic_rotate %66 by %c255_i32_39 dim 1 : vector<8x256xf32>, i32 -> vector<8x256xf32>
    %cst_40 = arith.constant 0.000000e+00 : f32
    %82 = vector.broadcast %cst_40 : f32 to vector<8x256xf32>
    %83 = arith.select %21, %81, %82 : vector<8x256xi1>, vector<8x256xf32>
    %c241_i32_41 = arith.constant 241 : i32
    %84 = tpu.dynamic_rotate %66 by %c241_i32_41 dim 1 : vector<8x256xf32>, i32 -> vector<8x256xf32>
    %cst_42 = arith.constant 0.000000e+00 : f32
    %85 = vector.broadcast %cst_42 : f32 to vector<8x256xf32>
    %86 = arith.select %26, %84, %85 : vector<8x256xi1>, vector<8x256xf32>
    %c240_i32_43 = arith.constant 240 : i32
    %87 = tpu.dynamic_rotate %66 by %c240_i32_43 dim 1 : vector<8x256xf32>, i32 -> vector<8x256xf32>
    %cst_44 = arith.constant 0.000000e+00 : f32
    %88 = vector.broadcast %cst_44 : f32 to vector<8x256xf32>
    %89 = arith.select %28, %87, %88 : vector<8x256xi1>, vector<8x256xf32>
    %c239_i32_45 = arith.constant 239 : i32
    %90 = tpu.dynamic_rotate %66 by %c239_i32_45 dim 1 : vector<8x256xf32>, i32 -> vector<8x256xf32>
    %cst_46 = arith.constant 0.000000e+00 : f32
    %91 = vector.broadcast %cst_46 : f32 to vector<8x256xf32>
    %92 = arith.select %33, %90, %91 : vector<8x256xi1>, vector<8x256xf32>
    %93 = tpu.concatenate %71, %74, %77, %80, %66, %83, %86, %89, %92 in 0 : vector<8x256xf32>, vector<8x256xf32>, vector<8x256xf32>, vector<8x256xf32>, vector<8x256xf32>, vector<8x256xf32>, vector<8x256xf32>, vector<8x256xf32>, vector<8x256xf32> -> vector<72x256xf32>
    %cst_47 = arith.constant dense<0.000000e+00> : vector<8x256xf32>
    %94 = tpu.matmul %67, %93, %cst_47 {dimension_numbers = #tpu.dot_dimension_numbers<[1], [0], [0], [1], [0, 0, 1, 1], [], []>} : vector<8x72xf32>, vector<72x256xf32>, vector<8x256xf32> -> vector<8x256xf32>
    %95 = vector.broadcast %68 : vector<8x1xf32> to vector<8x256xf32>
    %96 = arith.addf %94, %95 : vector<8x256xf32>
    %97 = arith.addf %96, %0 : vector<8x256xf32>
    %c0_48 = arith.constant 0 : index
    %c0_49 = arith.constant 0 : index
    %98 = vector.load %arg6[%c0_48, %c0_49] : memref<8x256xf32, #tpu.memory_space<vmem>>, vector<8x256xf32>
    tpu.vector_store %arg6[%c0_48, %c0_49], %97 {strides = array<i32>} : memref<8x256xf32, #tpu.memory_space<vmem>>, vector<8x256xf32>,
    return
  }
  func.func @transform_0(%arg0: i32) -> (i32, i32) {
    %c0_i32 = arith.constant 0 : i32
    %c0_i32_0 = arith.constant 0 : i32
    %c0_i32_1 = arith.constant 0 : i32
    return %c0_i32, %c0_i32_0 : i32, i32
  }
  func.func @transform_1(%arg0: i32) -> (i32, i32) {
    %c0_i32 = arith.constant 0 : i32
    %c0_i32_0 = arith.constant 0 : i32
    %c0_i32_1 = arith.constant 0 : i32
    return %c0_i32, %c0_i32_0 : i32, i32
  }
  func.func @transform_2(%arg0: i32) -> (i32, i32) {
    %c0_i32 = arith.constant 0 : i32
    %c0_i32_0 = arith.constant 0 : i32
    %c0_i32_1 = arith.constant 0 : i32
    return %c0_i32, %c0_i32_0 : i32, i32
  }
  func.func @transform_3(%arg0: i32) -> (i32, i32) {
    %c0_i32 = arith.constant 0 : i32
    %c0_i32_0 = arith.constant 0 : i32
    %c0_i32_1 = arith.constant 0 : i32
    return %c0_i32, %c0_i32_0 : i32, i32
  }
  func.func @transform_4(%arg0: i32) -> (i32, i32) {
    %c0_i32 = arith.constant 0 : i32
    %c0_i32_0 = arith.constant 0 : i32
    %c0_i32_1 = arith.constant 0 : i32
    return %c0_i32, %c0_i32_0 : i32, i32
  }
  func.func @transform_5(%arg0: i32) -> (i32, i32) {
    %c0_i32 = arith.constant 0 : i32
    %c0_i32_0 = arith.constant 0 : i32
    %c0_i32_1 = arith.constant 0 : i32
    return %c0_i32, %c0_i32_0 : i32, i32
  }
}

</mosaic_0001>

<bundles_post_ra>
// kernel: tpu_custom_call.1
= control target key start
LH: loop header
LB: loop body
LE: loop exit
PB: predicated region body
PF: predicated region fallthrough
CT: control target
= control target key end

     0   :  { %10 = vsyncpa [#allocation3], 0  ;;  %s882_s0 = inlined_call_operand.vmem [shape: f32[8,256], index: 0, kind: input, shape index: {}]   ;;  %s883_s1 = inlined_call_operand.hbm [shape: f32[8,72], index: 1, kind: input, shape index: {}]   ;;  %s884_s2 = inlined_call_operand.vmem [shape: f32[8,1], index: 2, kind: input, shape index: {}]   ;;  %s885_s3 = inlined_call_operand.hbm [shape: f32[8,72], index: 3, kind: input, shape index: {}]   ;;  %s886_s4 = inlined_call_operand.vmem [shape: f32[8,1], index: 4, kind: input, shape index: {}]   ;;  %s887_s5 = inlined_call_operand.hbm [shape: f32[8,256], index: 5, kind: output, shape index: {}]  }
   0x1   :  { %11 = vsyncpa [#allocation6], 0 }
   0x2   :  { %12 = vsyncpa [#allocation4], 0  ;;  %s507_s18 = smov [#allocation2]   ;;  %s508_s20 = smov [#allocation5]  }
   0x3   :  { %s21_s19 = sshll.u32 %s507_s18, 4  ;;  %s33_s21 = sshll.u32 %s508_s20, 4  ;;  %s22_s19 = int_to_ptr.vmem [resolvable:$true] %s21_s19  ;;  %s34_s21 = int_to_ptr.vmem [resolvable:$true] %s33_s21 }
   0x4   :  { %s449_s22 = scalar_lea.vmem %s22_s19, 128  ;;  %p454_p1 = scmp.lt.s32.totalorder %s22_s19, %s22_s19 }
   0x5   :  { %p450_p0 = scmp.ne.s32.totalorder %s22_s19, %s449_s22  ;;  %p455_p2 = scmp.lt.s32.totalorder %s449_s22, %s449_s22 }
   0x7   :  { %p456_p3 = por %p455_p2, %p454_p1 }
   0x9   :  { %p457_p4 = pnand %p456_p3, %p450_p0 }
   0xb   :  { %460 = shalt.err (!%p457_p4)
}
   0xc   :  { %24 = dma.hbm_to_vmem [thread:$0]  %s883_s1, 128, %s22_s19, [#allocation3]  }
   0xd   :  { %s469_s25 = scalar_lea.vmem %s34_s21, 128  ;;  %p474_p6 = scmp.lt.s32.totalorder %s34_s21, %s34_s21 }
   0xe   :  { %p470_p5 = scmp.ne.s32.totalorder %s34_s21, %s469_s25  ;;  %p475_p7 = scmp.lt.s32.totalorder %s469_s25, %s469_s25 }
  0x10   :  { %p476_p8 = por %p475_p7, %p474_p6 }
  0x12   :  { %p477_p9 = pnand %p476_p8, %p470_p5 }
  0x14   :  { %480 = shalt.err (!%p477_p9)
}
  0x15   :  { %36 = dma.hbm_to_vmem [thread:$0]  %s885_s3, 128, %s34_s21, [#allocation6]  }
  0x16   :  { %501 = dma.done.wait [#allocation3], 128  }
  0x17   :  { %502 = vsyncadd [#allocation3], 4294967168 }
  0x18   :  { %503 = dma.done.wait [#allocation6], 128  }
  0x19   :  { %504 = vsyncadd [#allocation6], 4294967168  ;;  %v559_v0 = vld [vmem:[%s882_s0] sm:$0xff]  ;;  %s509_s1 = smov 112   ;;  %s510_s30 = smov 111   ;;  %v568_v1 = vld [vmem:[%s882_s0 + $0x8] sm:$0xff]  ;;  %v47_v5 = vlaneseq }
  0x1a   :  { %126 = vrot.lane.b32.xlu1 %v559_v0, %s509_s1  ;;  %135 = vrot.lane.b32.xlu0 %v559_v0, %s510_s30  ;;  %s511_s3 = smov 113   ;;  %s512_s8 = smov 127   ;;  %v514_v2 = vmov 0.0   ;;  %v515_v3 = vmov 0   ;;  %v71_v4 = vld [vmem:[%s884_s2] sm:$0xff] }
  0x1b   :  { %s513_s0 = smov 1   ;;  %217 = vmatprep.mubr.f32.mxu0 %v514_v2  ;;  %366 = vmatprep.mubr.f32.mxu1 %v514_v2  ;;  %s516_s9 = smov 15   ;;  %v601_v6 = vand.u32 127, %v47_v5  ;;  %v70_v52 = vld [vmem:[#allocation2] sm:$0xff] }
  0x1c   :  { %440 = vset.pattern.permute.xlu0 %v515_v3  ;;  %s517_s10 = smov 16   ;;  %s518_s11 = smov 17   ;;  %v229_v62 = vld [vmem:[%s886_s4] sm:$0xff] }
  0x1d   :  { %v49_v7 = vadd.s32 128, %v601_v6  ;;  %v50_v10 = vand.u32 15, %v601_v6  ;;  %v52_v11 = vshra.s32 %v601_v6, 4  ;;  %vm139_vm4 = vcmp.lt.s32.totalorder %v601_v6, 111  ;;  %s519_s4 = smov [#allocation7]  }
  0x1e   :  { %128 = vrot.lane.b32.xlu1 %v568_v1, %s509_s1  ;;  %137 = vrot.lane.b32.xlu0 %v568_v1, %s510_s30  ;;  %vm130_vm6 = vcmp.lt.s32.totalorder %v601_v6, 112  ;;  %vm892_vm10 = vcmp.lt.s32.totalorder %v601_v6, 113  ;;  %vm888_vm13 = vcmp.lt.s32.totalorder %v601_v6, 127  ;;  %vm891_vm14 = vcmp.lt.s32.totalorder %v601_v6, 1  ;;  %s383_s15 = sshll.u32 %s519_s4, 4  ;;  %s384_s15 = int_to_ptr.vmem [resolvable:$true] %s383_s15 }
  0x1f   :  { %v51_v8 = vand.u32 15, %v49_v7  ;;  %v53_v9 = vshra.s32 %v49_v7, 4  ;;  %vm614_vm2 = vcmp.lt.s32.totalorder %v50_v10, 15  ;;  %vm618_vm3 = vcmp.lt.s32.totalorder %v52_v11, 15  ;;  %s481_s16 = scalar_lea.vmem %s384_s15, 256  ;;  %p486_p11 = scmp.lt.s32.totalorder %s384_s15, %s384_s15 }
  0x20   :  { %vm68_vm7 = vmand %vm618_vm3, %vm614_vm2  ;;  %vm640_vm9 = vcmp.ge.s32.totalorder %v50_v10, 1  ;;  %p482_p10 = scmp.ne.s32.totalorder %s384_s15, %s481_s16  ;;  %p487_p12 = scmp.lt.s32.totalorder %s481_s16, %s481_s16 }
  0x21   :  { %vm606_vm0 = vcmp.lt.s32.totalorder %v51_v8, 15  ;;  %vm610_vm1 = vcmp.lt.s32.totalorder %v53_v9, 15  ;;  %vm632_vm8 = vcmp.ge.s32.totalorder %v51_v8, 1  ;;  %vm889_vm12 = vmand %vm618_vm3, %vm640_vm9  ;;  %vm696_vm15 = vcmp.ge.s32.totalorder %v53_v9, 1 }
  0x22   :  { %119 = vrot.lane.b32.xlu1 %v568_v1, %s511_s3  ;;  %117 = vrot.lane.b32.xlu0 %v559_v0, %s511_s3  ;;  %vm69_vm5 = vmand %vm610_vm1, %vm606_vm0  ;;  %p488_p13 = por %p487_p12, %p486_p11 }
  0x23   :  { %vm890_vm11 = vmand %vm610_vm1, %vm632_vm8 }
  0x24   :  { %p489_p0 = pnand %p488_p13, %p482_p10 }
  0x26   :  { %110 = vrot.lane.b32.xlu1 %v568_v1, %s512_s8  ;;  %108 = vrot.lane.b32.xlu0 %v559_v0, %s512_s8 }
  0x2a   :  { %101 = vrot.lane.b32.xlu1 %v568_v1, %s513_s0  ;;  %99 = vrot.lane.b32.xlu0 %v559_v0, %s513_s0 }
  0x2e   :  { %92 = vrot.lane.b32.xlu1 %v568_v1, %s516_s9  ;;  %90 = vrot.lane.b32.xlu0 %v559_v0, %s516_s9 }
  0x32   :  { %83 = vrot.lane.b32.xlu1 %v568_v1, %s517_s10  ;;  %81 = vrot.lane.b32.xlu0 %v559_v0, %s517_s10 }
  0x36   :  { %74 = vrot.lane.b32.xlu1 %v568_v1, %s518_s11  ;;  %72 = vrot.lane.b32.xlu0 %v559_v0, %s518_s11 }
  0x3a   :  { %146 = vperm.xlu0 %440, %v71_v4  }
  0x8c   :  { %v127_v12 = vpop.permute.xlu1 %126  ;;  %v136_v13 = vpop.permute.xlu0 %135 }
  0x90   :  { %v129_v18 = vpop.permute.xlu1 %128  ;;  %v138_v19 = vpop.permute.xlu0 %137 }
  0x91   :  { %v141_v21 = vsel %vm139_vm4, %v138_v19, %v136_v13  ;;  %v140_v22 = vsel %vm139_vm4, %v136_v13, %v138_v19  ;;  %v132_v24 = vsel %vm130_vm6, %v129_v18, %v127_v12  ;;  %v131_v25 = vsel %vm130_vm6, %v127_v12, %v129_v18 }
  0x92   :  { %393 = vmatprep.subr.msk.mxu0 %vm69_vm5, %v141_v21 }
  0x93   :  { %394 = vmatpush1.msk.msra.mxu0 %vm68_vm7, %v140_v22 }
  0x94   :  { %v120_v26 = vpop.permute.xlu1 %119  ;;  %395 = vmatprep.subr.msk.mxu0 %vm610_vm1, %v132_v24  ;;  %v118_v27 = vpop.permute.xlu0 %117 }
  0x95   :  { %v122_v28 = vsel %vm892_vm10, %v118_v27, %v120_v26  ;;  %v123_v29 = vsel %vm892_vm10, %v120_v26, %v118_v27  ;;  %396 = vmatpush1.msk.msra.mxu0 %vm618_vm3, %v131_v25  ;;  %vm895_vm10 = vcmp.lt.s32.totalorder %v601_v6, 16 }
  0x96   :  { %397 = vmatprep.subr.msk.mxu0 %vm890_vm11, %v123_v29  ;;  %vm893_vm11 = vmand %vm696_vm15, %vm606_vm0 }
  0x97   :  { %398 = vmatpush1.msk.msra.mxu0 %vm889_vm12, %v122_v28  ;;  %vm896_vm12 = vcmp.lt.s32.totalorder %v601_v6, 15 }
  0x98   :  { %v111_v30 = vpop.permute.xlu1 %110  ;;  %v109_v31 = vpop.permute.xlu0 %108 }
  0x99   :  { %v113_v32 = vsel %vm888_vm13, %v109_v31, %v111_v30  ;;  %v114_v33 = vsel %vm888_vm13, %v111_v30, %v109_v31  ;;  %vm705_vm13 = vcmp.ge.s32.totalorder %v52_v11, 1 }
  0x9a   :  { %399 = vmatprep.subr.msk.mxu0 %vm606_vm0, %v114_v33 }
  0x9b   :  { %400 = vmatpush1.msk.msra.mxu0 %vm614_vm2, %v113_v32 }
  0x9c   :  { %v102_v34 = vpop.permute.xlu1 %101  ;;  %175 = vmatprep.subr.mxu0 %v568_v1  ;;  %v100_v35 = vpop.permute.xlu0 %99 }
  0x9d   :  { %v104_v37 = vsel %vm891_vm14, %v100_v35, %v102_v34  ;;  %v105_v38 = vsel %vm891_vm14, %v102_v34, %v100_v35  ;;  %176 = vmatpush1.msra.mxu0 %v559_v0  ;;  %vm894_vm14 = vmand %vm705_vm13, %vm614_vm2 }
  0x9e   :  { %401 = vmatprep.subr.msk.mxu0 %vm632_vm8, %v104_v37  ;;  %v228_v37 = vld [vmem:[#allocation5] sm:$0xff] }
  0x9f   :  { %402 = vmatpush1.msk.msra.mxu0 %vm640_vm9, %v105_v38 }
  0xa0   :  { %v93_v40 = vpop.permute.xlu1 %92  ;;  %v91_v41 = vpop.permute.xlu0 %90 }
  0xa1   :  { %v95_v42 = vsel %vm896_vm12, %v91_v41, %v93_v40  ;;  %v96_v43 = vsel %vm896_vm12, %v93_v40, %v91_v41  ;;  %vm897_vm12 = vcmask 588800  }
  0xa2   :  { %403 = vmatprep.subr.msk.mxu0 %vm893_vm11, %v95_v42  ;;  %vm76_vm11 = vcmp.lt.s32.totalorder %v601_v6, 17 }
  0xa3   :  { %404 = vmatpush1.msk.msra.mxu0 %vm894_vm14, %v96_v43  ;;  %vm59_vm14 = vmand %vm696_vm15, %vm632_vm8 }
  0xa4   :  { %v84_v44 = vpop.permute.xlu1 %83  ;;  %v82_v45 = vpop.permute.xlu0 %81 }
  0xa5   :  { %v86_v46 = vsel %vm895_vm10, %v82_v45, %v84_v44  ;;  %v87_v47 = vsel %vm895_vm10, %v84_v44, %v82_v45  ;;  %vm58_vm10 = vmand %vm705_vm13, %vm640_vm9 }
  0xa6   :  { %405 = vmatprep.subr.msk.mxu0 %vm696_vm15, %v86_v46 }
  0xa7   :  { %406 = vmatpush1.msk.msra.mxu0 %vm705_vm13, %v87_v47 }
  0xa8   :  { %v75_v48 = vpop.permute.xlu1 %74  ;;  %v73_v49 = vpop.permute.xlu0 %72 }
  0xa9   :  { %v77_v50 = vsel %vm76_vm11, %v73_v49, %v75_v48  ;;  %v78_v51 = vsel %vm76_vm11, %v75_v48, %v73_v49 }
  0xaa   :  { %407 = vmatprep.subr.msk.mxu0 %vm59_vm14, %v77_v50 }
  0xab   :  { %408 = vmatpush1.msk.msra.mxu0 %vm58_vm10, %v78_v51 }
  0xac   :  { %409 = vmatmul.mubr.msk.f32.vlgmr.msra.gmra.mxu0 %vm897_vm12, %v70_v52  ;;  %vm918_vm12 = vcmp.lt.s32.totalorder %v601_v6, 127 }
  0xb5   :  { %v147_v53 = vpop.permute.xlu0 %146 }
 0x16c   :  { %v219_v54 = vpop.f32.mrf.mxu0 }
 0x16d   :  { %v220_v55 = vadd.f32 %v219_v54, %v147_v53 }
 0x16e   :  { %v221_v56 = vpop.f32.mrf.mxu0 }
 0x16f   :  { %v224_v57 = vmul.f32 0.01, %v220_v55  ;;  %v222_v58 = vadd.f32 %v221_v56, %v147_v53 }
 0x171   :  { %v226_v59 = vmax.f32 %v220_v55, %v224_v57  ;;  %v225_v60 = vmul.f32 0.01, %v222_v58 }
 0x173   :  { %278 = vrot.lane.b32.xlu0 %v226_v59, %s509_s1  ;;  %286 = vrot.lane.b32.xlu1 %v226_v59, %s510_s30  ;;  %v227_v61 = vmax.f32 %v222_v58, %v225_v60 }
 0x177   :  { %270 = vrot.lane.b32.xlu0 %v226_v59, %s511_s3  ;;  %288 = vrot.lane.b32.xlu1 %v227_v61, %s510_s30 }
 0x17b   :  { %262 = vrot.lane.b32.xlu0 %v226_v59, %s512_s8  ;;  %280 = vrot.lane.b32.xlu1 %v227_v61, %s509_s1 }
 0x17f   :  { %254 = vrot.lane.b32.xlu0 %v226_v59, %s513_s0  ;;  %272 = vrot.lane.b32.xlu1 %v227_v61, %s511_s3 }
 0x183   :  { %246 = vrot.lane.b32.xlu0 %v226_v59, %s516_s9  ;;  %264 = vrot.lane.b32.xlu1 %v227_v61, %s512_s8 }
 0x187   :  { %238 = vrot.lane.b32.xlu0 %v226_v59, %s517_s10  ;;  %256 = vrot.lane.b32.xlu1 %v227_v61, %s513_s0 }
 0x18b   :  { %230 = vrot.lane.b32.xlu0 %v226_v59, %s518_s11  ;;  %248 = vrot.lane.b32.xlu1 %v227_v61, %s516_s9 }
 0x18f   :  { %296 = vperm.xlu0 %440, %v229_v62   ;;  %240 = vrot.lane.b32.xlu1 %v227_v61, %s517_s10 }
 0x193   :  { %232 = vrot.lane.b32.xlu1 %v227_v61, %s518_s11 }
 0x1e5   :  { %v279_v63 = vpop.permute.xlu0 %278  ;;  %v287_v2 = vpop.permute.xlu1 %286 }
 0x1e9   :  { %v271_v3 = vpop.permute.xlu0 %270  ;;  %v289_v4 = vpop.permute.xlu1 %288 }
 0x1ea   :  { %v291_v5 = vsel %vm139_vm4, %v289_v4, %v287_v2  ;;  %v290_v7 = vsel %vm139_vm4, %v287_v2, %v289_v4  ;;  %vm914_vm4 = vcmp.lt.s32.totalorder %v601_v6, 113 }
 0x1eb   :  { %410 = vmatprep.subr.msk.mxu1 %vm69_vm5, %v291_v5  ;;  %vm915_vm5 = vmmov %vm914_vm4 }
 0x1ec   :  { %411 = vmatpush1.msk.msra.mxu1 %vm68_vm7, %v290_v7  ;;  %vm916_vm7 = vmand %vm610_vm1, %vm632_vm8 }
 0x1ed   :  { %v263_v8 = vpop.permute.xlu0 %262  ;;  %v281_v9 = vpop.permute.xlu1 %280 }
 0x1ee   :  { %v282_v10 = vsel %vm130_vm6, %v279_v63, %v281_v9  ;;  %v283_v11 = vsel %vm130_vm6, %v281_v9, %v279_v63  ;;  %vm917_vm6 = vmand %vm618_vm3, %vm640_vm9 }
 0x1ef   :  { %412 = vmatprep.subr.msk.mxu1 %vm610_vm1, %v283_v11  ;;  %vm920_vm1 = vcmp.lt.s32.totalorder %v601_v6, 1 }
 0x1f0   :  { %413 = vmatpush1.msk.msra.mxu1 %vm618_vm3, %v282_v10  ;;  %vm921_vm3 = vmmov %vm920_vm1 }
 0x1f1   :  { %v273_v12 = vpop.permute.xlu1 %272  ;;  %v255_v19 = vpop.permute.xlu0 %254 }
 0x1f2   :  { %v274_v13 = vsel %vm914_vm4, %v271_v3, %v273_v12  ;;  %v275_v18 = vsel %vm915_vm5, %v273_v12, %v271_v3  ;;  %vm919_vm4 = vmmov %vm918_vm12 }
 0x1f3   :  { %414 = vmatprep.subr.msk.mxu1 %vm916_vm7, %v275_v18  ;;  %vm924_vm7 = vmand %vm696_vm15, %vm606_vm0 }
 0x1f4   :  { %415 = vmatpush1.msk.msra.mxu1 %vm917_vm6, %v274_v13  ;;  %vm925_vm6 = vmand %vm705_vm13, %vm614_vm2 }
 0x1f5   :  { %v265_v21 = vpop.permute.xlu1 %264  ;;  %v247_v15 = vpop.permute.xlu0 %246 }
 0x1f6   :  { %v266_v22 = vsel %vm918_vm12, %v263_v8, %v265_v21  ;;  %v267_v24 = vsel %vm919_vm4, %v265_v21, %v263_v8  ;;  %vm922_vm12 = vcmp.lt.s32.totalorder %v601_v6, 15  ;;  %vm926_vm4 = vcmp.lt.s32.totalorder %v601_v6, 16 }
 0x1f7   :  { %416 = vmatprep.subr.msk.mxu1 %vm606_vm0, %v267_v24  ;;  %vm923_vm5 = vmmov %vm922_vm12  ;;  %vm928_vm0 = vcmask 588800  }
 0x1f8   :  { %417 = vmatpush1.msk.msra.mxu1 %vm614_vm2, %v266_v22 }
 0x1f9   :  { %324 = vmatprep.subr.mxu1 %v227_v61  ;;  %v257_v17 = vpop.permute.xlu1 %256  ;;  %v239_v30 = vpop.permute.xlu0 %238 }
 0x1fa   :  { %v258_v25 = vsel %vm920_vm1, %v255_v19, %v257_v17  ;;  %v259_v26 = vsel %vm921_vm3, %v257_v17, %v255_v19  ;;  %325 = vmatpush1.msra.mxu1 %v226_v59  ;;  %vm927_vm1 = vmmov %vm926_vm4 }
 0x1fb   :  { %418 = vmatprep.subr.msk.mxu1 %vm632_vm8, %v258_v25 }
 0x1fc   :  { %419 = vmatpush1.msk.msra.mxu1 %vm640_vm9, %v259_v26 }
 0x1fd   :  { %v249_v27 = vpop.permute.xlu1 %248  ;;  %v231_v14 = vpop.permute.xlu0 %230 }
 0x1fe   :  { %v250_v28 = vsel %vm922_vm12, %v247_v15, %v249_v27  ;;  %v251_v29 = vsel %vm923_vm5, %v249_v27, %v247_v15 }
 0x1ff   :  { %420 = vmatprep.subr.msk.mxu1 %vm924_vm7, %v250_v28 }
 0x200   :  { %421 = vmatpush1.msk.msra.mxu1 %vm925_vm6, %v251_v29 }
 0x201   :  { %v241_v31 = vpop.permute.xlu1 %240 }
 0x202   :  { %v242_v32 = vsel %vm926_vm4, %v239_v30, %v241_v31  ;;  %v243_v33 = vsel %vm927_vm1, %v241_v31, %v239_v30 }
 0x203   :  { %422 = vmatprep.subr.msk.mxu1 %vm696_vm15, %v242_v32 }
 0x204   :  { %423 = vmatpush1.msk.msra.mxu1 %vm705_vm13, %v243_v33 }
 0x205   :  { %v233_v34 = vpop.permute.xlu1 %232 }
 0x206   :  { %v234_v16 = vsel %vm76_vm11, %v231_v14, %v233_v34  ;;  %v235_v35 = vsel %vm76_vm11, %v233_v34, %v231_v14 }
 0x207   :  { %424 = vmatprep.subr.msk.mxu1 %vm59_vm14, %v234_v16 }
 0x208   :  { %425 = vmatpush1.msk.msra.mxu1 %vm58_vm10, %v235_v35 }
 0x209   :  { %426 = vmatmul.mubr.msk.f32.vlgmr.msra.gmra.mxu1 %vm928_vm0, %v228_v37 }
 0x20a   :  { %v297_v38 = vpop.permute.xlu0 %296 }
 0x2c9   :  { %v368_v40 = vpop.f32.mrf.mxu1 }
 0x2ca   :  { %v369_v41 = vadd.f32 %v368_v40, %v297_v38 }
 0x2cb   :  { %v370_v6 = vpop.f32.mrf.mxu1 }
 0x2cc   :  { %v373_v36 = vadd.f32 %v369_v41, %v559_v0  ;;  %v371_v42 = vadd.f32 %v370_v6, %v297_v38 }
 0x2ce   :  { %375 = vst [vmem:[#allocation7] sm:$0xff] %v373_v36  ;;  %v374_v20 = vadd.f32 %v371_v42, %v568_v1 }
 0x2d0   :  { %376 = vst [vmem:[#allocation7 + $0x8] sm:$0xff] %v374_v20 }
 0x2d1   :  { %492 = shalt.err (!%p489_p0)
}
 0x2d2   :  { %386 = dma.vmem_to_hbm [thread:$0]  %s384_s15, 256, %s887_s5, [#allocation4]  }
 0x2d3   :  { %505 = dma.done.wait [#allocation4], 256  }
 0x2d4   :  { %506 = vsyncadd [#allocation4], 4294967040 }
 0x2d5   :  { %390 = vsyncpa [#allocation3], 1 }
 0x2d6   :  { %391 = vsyncpa [#allocation6], 1 }
 0x2d7   :  { %392 = vsyncpa [#allocation4], 1 }

</bundles_post_ra>
